<compile_context>
chip_gen: v7x
topology: tpu7x:2x2x1
jax: 0.10.0
libtpu: 0.0.40
codegen_flags: <defaults>
</compile_context>

<pallas_src>
import jax
import jax.numpy as jnp
from jax.experimental import pallas as pl
from jax.experimental.pallas import tpu as pltpu

# --- model hyper-parameters -------------------------------------------------
# The torch forward hard-codes attn_output.view(B, f=100, l=2), so the hidden
# size (filter_num * len(filter_sizes)) must be 200.
VOCAB_SIZE = 50
EMBED_SIZE = 32
FILTER_NUM = 100
FILTER_SIZES = (3, 4)
SEQ_LEN = 16
BATCH = 2
HIDDEN = FILTER_NUM * len(FILTER_SIZES)      # 200
F_OUT, L_OUT = 100, 2

# Padded / aligned sizes used by the kernel.
FN_PAD = 128                                  # filter_num 100 -> one full lane tile
WIN = max(FILTER_SIZES)                       # 4 (shared window; fs=3 uses first 3 slots)
V_PAD = 128                                   # vocab 50 -> one lane tile per window slot
K_FOLD = WIN * V_PAD                          # 512  contraction dim of the fused matmul
ROWS = BATCH * SEQ_LEN                        # 32   conv-window rows (tail rows invalid)
N_OUT = 2 * FN_PAD                            # 256  [fs=3 filters | fs=4 filters]
L_OUTS = tuple(SEQ_LEN - fs + 1 for fs in FILTER_SIZES)   # (14, 13) valid windows


# --- Pallas kernel ----------------------------------------------------------
def textcnn_attention_kernel(idx_ref, w_ref, b_ref, out_ref):
    # idx_ref: (ROWS, WIN)      int32 window token ids; -1 marks out-of-range.
    # w_ref  : (K_FOLD, N_OUT)  f32 embedding-folded conv weights.
    # b_ref  : (1, N_OUT)       f32 conv bias, zero padded.
    # out_ref: (BATCH, N_OUT)   f32 [pool3 | pool4], lane-dense, 128-aligned.

    idx = idx_ref[...]                                               # (32, 4)

    # One-hot of the WIN window token ids laid out along 512 lanes:
    # lanes [k*128, (k+1)*128) hold one-hot(idx[:, k]).  Pure VPU work
    # (iota / broadcast / select / compare) — no relayouts.
    lane = jax.lax.broadcasted_iota(jnp.int32, (ROWS, K_FOLD), 1)
    v = jnp.bitwise_and(lane, V_PAD - 1)                             # lane % 128
    idx_b = jnp.where(lane < V_PAD, idx[:, 0:1],
             jnp.where(lane < 2 * V_PAD, idx[:, 1:2],
              jnp.where(lane < 3 * V_PAD, idx[:, 2:3], idx[:, 3:4])))
    onehot = (idx_b == v).astype(jnp.float32)                        # (32, 512); -1 -> zeros

    # Fused gather + im2col + both convs: a single MXU matmul (32,512)@(512,256).
    acc = jnp.dot(onehot, w_ref[...], preferred_element_type=jnp.float32)
    acc = jnp.maximum(acc + b_ref[...], 0.0)                         # bias + ReLU

    # Mask invalid window rows (fs=3 half: i < 14, fs=4 half: i < 13) and
    # max-pool over the window axis.  Zero fill is safe for the max only
    # because ReLU outputs are >= 0.
    acc = acc.reshape(BATCH, SEQ_LEN, N_OUT)
    row = jax.lax.broadcasted_iota(jnp.int32, acc.shape, 1)
    col = jax.lax.broadcasted_iota(jnp.int32, acc.shape, 2)
    limit = jnp.where(col < FN_PAD, L_OUTS[0], L_OUTS[1])
    acc = jnp.where(row < limit, acc, 0.0)

    # Additive attention over cnn_out.unsqueeze(1): sequence length is 1, so
    # softmax(dim=1) == 1.0 and the weighted sum equals cnn_out = [p3 | p4].
    # The Linear/tanh/context/softmax are dead compute and deliberately elided.
    out_ref[...] = jnp.max(acc, axis=1)                              # one (2,256) store


# --- one-time parameter preparation (load time, NOT on the call path) -------
def prepare_params(params):
    """Fold the embedding table through the conv weights into a single RHS."""
    table = params["embedding"].astype(jnp.float32)                  # (50, 32)
    w_fold = jnp.zeros((K_FOLD, N_OUT), jnp.float32)
    b_cat = jnp.zeros((1, N_OUT), jnp.float32)
    for half, fs in enumerate(FILTER_SIZES):
        w = params[f"conv{fs}_w"][:, 0].astype(jnp.float32)          # (FN, fs, E)
        for k in range(fs):
            blk = table @ w[:, k, :].T                               # (50, FN)
            w_fold = w_fold.at[k * V_PAD: k * V_PAD + VOCAB_SIZE,
                               half * FN_PAD: half * FN_PAD + FILTER_NUM].set(blk)
        b_cat = b_cat.at[0, half * FN_PAD: half * FN_PAD + FILTER_NUM].set(
            params[f"conv{fs}_b"].astype(jnp.float32))
    return {"w_fold": w_fold, "b_cat": b_cat}


# --- per-call wrapper --------------------------------------------------------
def _window_ids(x_ids):
    """(B, L) token ids -> (B*L, WIN) int32 window ids, -1 for out-of-range."""
    ids = x_ids.astype(jnp.int32)
    ids = jnp.concatenate(
        [ids, jnp.full((BATCH, WIN - 1), -1, jnp.int32)], axis=1)    # (B, L+WIN-1)
    pos = jnp.arange(SEQ_LEN)[:, None] + jnp.arange(WIN)[None, :]    # static (L, WIN)
    win = ids[:, pos]                                                # (B, L, WIN)
    return win.reshape(ROWS, WIN)


def textcnn_with_attention_pallas(x_ids, kparams):
    idx_win = _window_ids(x_ids)          # tiny int32 index prep (~150 bytes)

    out = pl.pallas_call(
        textcnn_attention_kernel,
        out_shape=jax.ShapeDtypeStruct((BATCH, N_OUT), jnp.float32),
        in_specs=[pl.BlockSpec(memory_space=pltpu.MemorySpace.VMEM),
                  pl.BlockSpec(memory_space=pltpu.MemorySpace.VMEM),
                  pl.BlockSpec(memory_space=pltpu.MemorySpace.VMEM)],
        out_specs=pl.BlockSpec(memory_space=pltpu.MemorySpace.VMEM),
        # No grid: everything resident in VMEM (< 1 MiB), single invocation.
        compiler_params=pltpu.CompilerParams(),
        cost_estimate=pl.CostEstimate(
            flops=2 * ROWS * K_FOLD * N_OUT,
            transcendentals=0,
            bytes_accessed=(ROWS * WIN * 4 + K_FOLD * N_OUT * 4
                            + N_OUT * 4 + BATCH * N_OUT * 4)),
    )(idx_win, kparams["w_fold"], kparams["b_cat"])

    # TODO(synk): nn.Dropout is a no-op here (inference / eval semantics).
    # Unpad FN 128->100, concat [pool3|pool4] -> (B, 200), torch .view(B,100,2).
    hidden = jnp.concatenate(
        [out[:, :FILTER_NUM], out[:, FN_PAD:FN_PAD + FILTER_NUM]], axis=1)
    return hidden.reshape(BATCH, F_OUT, L_OUT)


# --- plain-JAX reference (structurally independent: lax.conv + full attention) ---
def reference_forward(x_ids, params):
    emb = params["embedding"][x_ids].astype(jnp.float32)      # (B, L, E)
    inp = emb[:, None, :, :]                                  # (B, 1, L, E) NCHW
    pooled = []
    for fs in FILTER_SIZES:
        w = params[f"conv{fs}_w"]                             # (FN, 1, fs, E) OIHW
        b = params[f"conv{fs}_b"]
        conv = jax.lax.conv_general_dilated(
            inp, w, window_strides=(1, 1), padding="VALID",
            dimension_numbers=("NCHW", "OIHW", "NCHW"))       # (B, FN, l_out, 1)
        conv = jax.nn.relu(conv + b[None, :, None, None])[..., 0]
        pooled.append(jnp.max(conv, axis=2))                  # (B, FN)
    cnn = jnp.concatenate(pooled, axis=1)                     # (B, H)
    hs = cnn[:, None, :]                                      # (B, 1, H)
    scores = jnp.tanh(hs @ params["attn_w"].T + params["attn_b"])
    scores = (scores @ params["ctx"][:, None])[..., 0]        # (B, 1)
    attn_w = jax.nn.softmax(scores, axis=1)
    weighted = jnp.einsum("bl,blh->bh", attn_w, hs)           # (B, H)
    return weighted.reshape(BATCH, F_OUT, L_OUT)


# --- main -------------------------------------------------------------------
if __name__ == "__main__":
    key = jax.random.PRNGKey(0)
    ks = jax.random.split(key, 9)
    params = {
        "embedding": jax.random.normal(ks[0], (VOCAB_SIZE, EMBED_SIZE), jnp.float32),
        "conv3_w": 0.1 * jax.random.normal(ks[1], (FILTER_NUM, 1, 3, EMBED_SIZE), jnp.float32),
        "conv3_b": 0.1 * jax.random.normal(ks[2], (FILTER_NUM,), jnp.float32),
        "conv4_w": 0.1 * jax.random.normal(ks[3], (FILTER_NUM, 1, 4, EMBED_SIZE), jnp.float32),
        "conv4_b": 0.1 * jax.random.normal(ks[4], (FILTER_NUM,), jnp.float32),
        "attn_w": 0.05 * jax.random.normal(ks[5], (HIDDEN, HIDDEN), jnp.float32),
        "attn_b": 0.05 * jax.random.normal(ks[6], (HIDDEN,), jnp.float32),
        "ctx": jax.random.normal(ks[7], (HIDDEN,), jnp.float32),
    }
    x_ids = jax.random.randint(ks[8], (BATCH, SEQ_LEN), 0, VOCAB_SIZE, dtype=jnp.int32)

    # One-time weight fold / layout (load time), then the jitted per-call path.
    kparams = jax.tree_util.tree_map(jax.block_until_ready, prepare_params(params))
    forward = jax.jit(textcnn_with_attention_pallas)

    out = jax.block_until_ready(forward(x_ids, kparams))
    ref = jax.block_until_ready(reference_forward(x_ids, params))

    assert out.shape == (BATCH, F_OUT, L_OUT), out.shape
    assert bool(jnp.allclose(out, ref, rtol=1e-3, atol=1e-3)), (
        float(jnp.max(jnp.abs(out - ref))))
    print("KERNEL_OK")
</pallas_src>

<mosaic_0001>
module attributes {stable_mosaic.version = 11 : i64} {
  func.func @textcnn_attention_kernel(%arg0: memref<32x4xi32, #tpu.memory_space<vmem>>, %arg1: memref<512x256xf32, #tpu.memory_space<vmem>>, %arg2: memref<1x256xf32, #tpu.memory_space<vmem>>, %arg3: memref<2x256xf32, #tpu.memory_space<vmem>>) attributes {dimension_semantics = [], scalar_prefetch = 0 : i64, scratch_operands = 0 : i64, tpu.core_type = #tpu.core_type<tc>} {
    %c0 = arith.constant 0 : index
    %c0_0 = arith.constant 0 : index
    %0 = vector.load %arg0[%c0, %c0_0] : memref<32x4xi32, #tpu.memory_space<vmem>>, vector<32x4xi32>
    %1 = tpu.iota {dimensions = array<i32: 1>} : vector<32x512xi32>
    %c127_i32 = arith.constant 127 : i32
    %2 = vector.broadcast %c127_i32 : i32 to vector<32x512xi32>
    %3 = arith.andi %1, %2 : vector<32x512xi32>
    %c128_i32 = arith.constant 128 : i32
    %4 = vector.broadcast %c128_i32 : i32 to vector<32x512xi32>
    %5 = arith.cmpi slt, %1, %4 : vector<32x512xi32>
    %6 = vector.extract_strided_slice %0 {offsets = [0, 0], sizes = [32, 1], strides = [1, 1]} : vector<32x4xi32> to vector<32x1xi32>
    %c256_i32 = arith.constant 256 : i32
    %7 = vector.broadcast %c256_i32 : i32 to vector<32x512xi32>
    %8 = arith.cmpi slt, %1, %7 : vector<32x512xi32>
    %9 = vector.extract_strided_slice %0 {offsets = [0, 1], sizes = [32, 1], strides = [1, 1]} : vector<32x4xi32> to vector<32x1xi32>
    %c384_i32 = arith.constant 384 : i32
    %10 = vector.broadcast %c384_i32 : i32 to vector<32x512xi32>
    %11 = arith.cmpi slt, %1, %10 : vector<32x512xi32>
    %12 = vector.extract_strided_slice %0 {offsets = [0, 2], sizes = [32, 1], strides = [1, 1]} : vector<32x4xi32> to vector<32x1xi32>
    %13 = vector.extract_strided_slice %0 {offsets = [0, 3], sizes = [32, 1], strides = [1, 1]} : vector<32x4xi32> to vector<32x1xi32>
    %14 = vector.shape_cast %12 : vector<32x1xi32> to vector<32x1xi32>
    %15 = vector.broadcast %14 : vector<32x1xi32> to vector<32x512xi32>
    %16 = vector.shape_cast %13 : vector<32x1xi32> to vector<32x1xi32>
    %17 = vector.broadcast %16 : vector<32x1xi32> to vector<32x512xi32>
    %18 = arith.select %11, %15, %17 : vector<32x512xi1>, vector<32x512xi32>
    %19 = vector.shape_cast %9 : vector<32x1xi32> to vector<32x1xi32>
    %20 = vector.broadcast %19 : vector<32x1xi32> to vector<32x512xi32>
    %21 = arith.select %8, %20, %18 : vector<32x512xi1>, vector<32x512xi32>
    %22 = vector.shape_cast %6 : vector<32x1xi32> to vector<32x1xi32>
    %23 = vector.broadcast %22 : vector<32x1xi32> to vector<32x512xi32>
    %24 = arith.select %5, %23, %21 : vector<32x512xi1>, vector<32x512xi32>
    %25 = arith.cmpi eq, %24, %3 : vector<32x512xi32>
    %26 = arith.extui %25 : vector<32x512xi1> to vector<32x512xi32>
    %27 = arith.sitofp %26 : vector<32x512xi32> to vector<32x512xf32>
    %c0_1 = arith.constant 0 : index
    %c0_2 = arith.constant 0 : index
    %28 = vector.load %arg1[%c0_1, %c0_2] : memref<512x256xf32, #tpu.memory_space<vmem>>, vector<512x256xf32>
    %cst = arith.constant dense<0.000000e+00> : vector<32x256xf32>
    %29 = tpu.matmul %27, %28, %cst {dimension_numbers = #tpu.dot_dimension_numbers<[1], [0], [0], [1], [0, 0, 1, 1], [], []>} : vector<32x512xf32>, vector<512x256xf32>, vector<32x256xf32> -> vector<32x256xf32>
    %c0_3 = arith.constant 0 : index
    %c0_4 = arith.constant 0 : index
    %30 = vector.load %arg2[%c0_3, %c0_4] : memref<1x256xf32, #tpu.memory_space<vmem>>, vector<1x256xf32>
    %31 = vector.broadcast %30 : vector<1x256xf32> to vector<32x256xf32>
    %32 = arith.addf %29, %31 : vector<32x256xf32>
    %cst_5 = arith.constant 0.000000e+00 : f32
    %33 = vector.broadcast %cst_5 : f32 to vector<32x256xf32>
    %34 = arith.maximumf %32, %33 : vector<32x256xf32>
    %35 = vector.shape_cast %34 : vector<32x256xf32> to vector<2x16x256xf32>
    %36 = tpu.iota {dimensions = array<i32: 1>} : vector<2x16x256xi32>
    %37 = tpu.iota {dimensions = array<i32: 2>} : vector<2x16x256xi32>
    %c128_i32_6 = arith.constant 128 : i32
    %38 = vector.broadcast %c128_i32_6 : i32 to vector<2x16x256xi32>
    %39 = arith.cmpi slt, %37, %38 : vector<2x16x256xi32>
    %c14_i32 = arith.constant 14 : i32
    %c13_i32 = arith.constant 13 : i32
    %40 = vector.broadcast %c14_i32 : i32 to vector<2x16x256xi32>
    %41 = vector.broadcast %c13_i32 : i32 to vector<2x16x256xi32>
    %42 = arith.select %39, %40, %41 : vector<2x16x256xi1>, vector<2x16x256xi32>
    %43 = arith.cmpi slt, %36, %42 : vector<2x16x256xi32>
    %cst_7 = arith.constant 0.000000e+00 : f32
    %44 = vector.broadcast %cst_7 : f32 to vector<2x16x256xf32>
    %45 = arith.select %43, %35, %44 : vector<2x16x256xi1>, vector<2x16x256xf32>
    %cst_8 = arith.constant dense<0xFF800000> : vector<2x256xf32>
    %46 = vector.multi_reduction <maximumf>, %45, %cst_8 [1] : vector<2x16x256xf32> to vector<2x256xf32>
    %c0_9 = arith.constant 0 : index
    %c0_10 = arith.constant 0 : index
    %47 = vector.load %arg3[%c0_9, %c0_10] : memref<2x256xf32, #tpu.memory_space<vmem>>, vector<2x256xf32>
    tpu.vector_store %arg3[%c0_9, %c0_10], %46 {strides = array<i32>} : memref<2x256xf32, #tpu.memory_space<vmem>>, vector<2x256xf32>,
    return
  }
}

</mosaic_0001>

<bundles_post_ra>
// kernel: textcnn_with_attention_pallas.1
= control target key start
LH: loop header
LB: loop body
LE: loop exit
PB: predicated region body
PF: predicated region fallthrough
CT: control target
= control target key end

     0   :  { %8 = vsyncpa [#allocation3], 0  ;;  %s832_s12 = smov [#allocation2]   ;;  %s916_s0 = inlined_call_operand.vmem [shape: s32[32,4], index: 0, kind: input, shape index: {}]   ;;  %s917_s1 = inlined_call_operand.hbm [shape: f32[512,256], index: 1, kind: input, shape index: {}]   ;;  %s918_s2 = inlined_call_operand.vmem [shape: f32[1,256], index: 2, kind: input, shape index: {}]   ;;  %s919_s3 = inlined_call_operand.vmem [shape: f32[2,256], index: 3, kind: output, shape index: {}]  }
   0x1   :  { %s16_s13 = sshll.u32 %s832_s12, 4  ;;  %s808_s16 = scalar_lea.hbm %s917_s1, 16384  ;;  %s17_s13 = int_to_ptr.vmem [resolvable:$true] %s16_s13 }
   0x2   :  { %p809_p0 = scmp.ne.s32.totalorder %s917_s1, %s808_s16  ;;  %p812_p1 = scmp.lt.u32.totalorder %s808_s16, %s917_s1 }
   0x4   :  { %p814_p2 = pnand %p812_p1, %p809_p0 }
   0x6   :  { %817 = shalt.err (!%p814_p2)
}
   0x7   :  { %s818_s21 = scalar_lea.vmem %s17_s13, 16384  ;;  %p823_p4 = scmp.lt.s32.totalorder %s17_s13, %s17_s13 }
   0x8   :  { %p819_p3 = scmp.ne.s32.totalorder %s17_s13, %s818_s21  ;;  %p824_p5 = scmp.lt.s32.totalorder %s818_s21, %s818_s21 }
   0xa   :  { %p825_p6 = por %p824_p5, %p823_p4 }
   0xc   :  { %p826_p7 = pnand %p825_p6, %p819_p3 }
   0xe   :  { %829 = shalt.err (!%p826_p7)
}
   0xf   :  { %s833_s22 = smov 256   ;;  %s834_s23 = smov 16  }
  0x10   :  { %22 = dma.hbm_to_vmem [thread:$0]  %s917_s1, 16384, %s17_s13, [#allocation3], %s833_s22, %s833_s22, %s834_s23  }
  0x11   :  { %830 = dma.done.wait [#allocation3], 16384  }
  0x12   :  { %831 = vsyncadd [#allocation3], 4294950912  ;;  %v835_v0 = vmov 1   ;;  %v836_v1 = vmov 3   ;;  %v28_v2 = vld [vmem:[%s916_s0] sm:$0xff]  ;;  %v198_v3 = vld [vmem:[#allocation2 + $0x8] sm:$0xff] }
  0x13   :  { %793 = vset.pattern.permute.xlu0 %v835_v0  ;;  %795 = vset.pattern.permute.xlu1 %v836_v1  ;;  %v200_v4 = vld [vmem:[#allocation2 + $0x18] sm:$0xff]  ;;  %v262_v6 = vld [vmem:[#allocation2 + $0x208] sm:$0xff]  ;;  %v197_v8 = vld [vmem:[#allocation2] sm:$0xff]  ;;  %v837_v18 = vmov 2   ;;  %v838_v19 = vmov 0  }
  0x14   :  { %66 = vperm.xlu1 %795, %v28_v2   ;;  %94 = vperm.xlu0 %793, %v28_v2   ;;  %v640_v5 = vpack.c.bf16 %v200_v4, %v198_v3  ;;  %v264_v7 = vld [vmem:[#allocation2 + $0x218] sm:$0xff]  ;;  %v199_v10 = vld [vmem:[#allocation2 + $0x10] sm:$0xff]  ;;  %v261_v11 = vld [vmem:[#allocation2 + $0x200] sm:$0xff] }
  0x15   :  { %v704_v9 = vpack.c.bf16 %v264_v7, %v262_v6  ;;  %v263_v12 = vld [vmem:[#allocation2 + $0x210] sm:$0xff]  ;;  %v642_v13 = vpack.c.bf16 %v199_v10, %v197_v8  ;;  %v202_v15 = vld [vmem:[#allocation2 + $0x28] sm:$0xff]  ;;  %v204_v16 = vld [vmem:[#allocation2 + $0x38] sm:$0xff] }
  0x16   :  { %641 = vmatprep.subr.bf16.mxu1 %v640_v5  ;;  %v706_v14 = vpack.c.bf16 %v263_v12, %v261_v11  ;;  %v266_v17 = vld [vmem:[#allocation2 + $0x228] sm:$0xff]  ;;  %v644_v21 = vpack.c.bf16 %v204_v16, %v202_v15  ;;  %v268_v22 = vld [vmem:[#allocation2 + $0x238] sm:$0xff]  ;;  %v201_v23 = vld [vmem:[#allocation2 + $0x20] sm:$0xff] }
  0x17   :  { %v29_v20 = vld [vmem:[%s916_s0 + $0x8] sm:$0xff]  ;;  %v203_v24 = vld [vmem:[#allocation2 + $0x30] sm:$0xff]  ;;  %v708_v25 = vpack.c.bf16 %v268_v22, %v266_v17  ;;  %v265_v26 = vld [vmem:[#allocation2 + $0x220] sm:$0xff]  ;;  %705 = vmatprep.subr.bf16.mxu0 %v704_v9  ;;  %643 = vmatpush1.bf16.msra.mxu1 %v642_v13 }
  0x18   :  { %796 = vset.pattern.permute.xlu1 %v837_v18  ;;  %794 = vset.pattern.permute.xlu0 %v838_v19  ;;  %v267_v27 = vld [vmem:[#allocation2 + $0x230] sm:$0xff]  ;;  %v206_v28 = vld [vmem:[#allocation2 + $0x48] sm:$0xff]  ;;  %v646_v29 = vpack.c.bf16 %v203_v24, %v201_v23  ;;  %v208_v30 = vld [vmem:[#allocation2 + $0x58] sm:$0xff] }
  0x19   :  { %54 = vperm.xlu1 %796, %v28_v2   ;;  %122 = vperm.xlu0 %794, %v28_v2   ;;  %v270_v31 = vld [vmem:[#allocation2 + $0x248] sm:$0xff]  ;;  %v272_v32 = vld [vmem:[#allocation2 + $0x258] sm:$0xff]  ;;  %v710_v33 = vpack.c.bf16 %v267_v27, %v265_v26  ;;  %v648_v34 = vpack.c.bf16 %v208_v30, %v206_v28  ;;  %v205_v36 = vld [vmem:[#allocation2 + $0x40] sm:$0xff] }
  0x1a   :  { %707 = vmatpush1.bf16.msra.mxu0 %v706_v14  ;;  %645 = vmatprep.subr.bf16.mxu1 %v644_v21  ;;  %v712_v35 = vpack.c.bf16 %v272_v32, %v270_v31  ;;  %v207_v37 = vld [vmem:[#allocation2 + $0x50] sm:$0xff]  ;;  %v269_v38 = vld [vmem:[#allocation2 + $0x240] sm:$0xff]  ;;  %v210_v40 = vld [vmem:[#allocation2 + $0x68] sm:$0xff] }
  0x1b   :  { %709 = vmatprep.subr.bf16.mxu0 %v708_v25  ;;  %v271_v39 = vld [vmem:[#allocation2 + $0x250] sm:$0xff]  ;;  %v212_v41 = vld [vmem:[#allocation2 + $0x78] sm:$0xff]  ;;  %647 = vmatpush1.bf16.msra.mxu1 %v646_v29  ;;  %v274_v42 = vld [vmem:[#allocation2 + $0x268] sm:$0xff]  ;;  %v650_v44 = vpack.c.bf16 %v207_v37, %v205_v36 }
  0x1c   :  { %v276_v43 = vld [vmem:[#allocation2 + $0x278] sm:$0xff]  ;;  %649 = vmatprep.subr.bf16.mxu1 %v648_v34  ;;  %v714_v45 = vpack.c.bf16 %v271_v39, %v269_v38  ;;  %v652_v46 = vpack.c.bf16 %v212_v41, %v210_v40  ;;  %v209_v48 = vld [vmem:[#allocation2 + $0x60] sm:$0xff]  ;;  %v211_v49 = vld [vmem:[#allocation2 + $0x70] sm:$0xff] }
  0x1d   :  { %797 = vset.pattern.permute.xlu1 %v835_v0  ;;  %125 = vperm.xlu0 %794, %v29_v20   ;;  %v716_v47 = vpack.c.bf16 %v276_v43, %v274_v42  ;;  %v273_v50 = vld [vmem:[#allocation2 + $0x260] sm:$0xff]  ;;  %v275_v51 = vld [vmem:[#allocation2 + $0x270] sm:$0xff]  ;;  %v214_v52 = vld [vmem:[#allocation2 + $0x88] sm:$0xff]  ;;  %v654_v56 = vpack.c.bf16 %v211_v49, %v209_v48 }
  0x1e   :  { %97 = vperm.xlu1 %797, %v29_v20   ;;  %711 = vmatpush1.bf16.msra.mxu0 %v710_v33  ;;  %v216_v53 = vld [vmem:[#allocation2 + $0x98] sm:$0xff]  ;;  %v278_v54 = vld [vmem:[#allocation2 + $0x288] sm:$0xff]  ;;  %v30_v57 = vld [vmem:[%s916_s0 + $0x10] sm:$0xff]  ;;  %v718_v58 = vpack.c.bf16 %v275_v51, %v273_v50 }
  0x1f   :  { %713 = vmatprep.subr.bf16.mxu0 %v712_v35  ;;  %651 = vmatpush1.bf16.msra.mxu1 %v650_v44  ;;  %v280_v55 = vld [vmem:[#allocation2 + $0x298] sm:$0xff]  ;;  %v656_v59 = vpack.c.bf16 %v216_v53, %v214_v52  ;;  %v213_v61 = vld [vmem:[#allocation2 + $0x80] sm:$0xff]  ;;  %v215_v62 = vld [vmem:[#allocation2 + $0x90] sm:$0xff] }
  0x20   :  { %653 = vmatprep.subr.bf16.mxu1 %v652_v46  ;;  %v720_v60 = vpack.c.bf16 %v280_v55, %v278_v54  ;;  %v277_v63 = vld [vmem:[#allocation2 + $0x280] sm:$0xff]  ;;  %v279_v2 = vld [vmem:[#allocation2 + $0x290] sm:$0xff]  ;;  %v218_v3 = vld [vmem:[#allocation2 + $0xa8] sm:$0xff]  ;;  %v658_v7 = vpack.c.bf16 %v215_v62, %v213_v61 }
  0x21   :  { %799 = vset.pattern.permute.xlu0 %v837_v18  ;;  %v220_v4 = vld [vmem:[#allocation2 + $0xb8] sm:$0xff]  ;;  %v282_v5 = vld [vmem:[#allocation2 + $0x2a8] sm:$0xff]  ;;  %v722_v9 = vpack.c.bf16 %v279_v2, %v277_v63  ;;  %v217_v11 = vld [vmem:[#allocation2 + $0xa0] sm:$0xff] }
  0x22   :  { %798 = vset.pattern.permute.xlu1 %v836_v1  ;;  %57 = vperm.xlu0 %799, %v29_v20   ;;  %v284_v6 = vld [vmem:[#allocation2 + $0x2b8] sm:$0xff]  ;;  %v660_v10 = vpack.c.bf16 %v220_v4, %v218_v3  ;;  %v219_v12 = vld [vmem:[#allocation2 + $0xb0] sm:$0xff]  ;;  %v281_v14 = vld [vmem:[#allocation2 + $0x2a0] sm:$0xff] }
  0x23   :  { %69 = vperm.xlu1 %798, %v29_v20   ;;  %715 = vmatpush1.bf16.msra.mxu0 %v714_v45  ;;  %v894_v8 = vld [vmem:[%s916_s0 + $0x18] sm:$0xff]  ;;  %v724_v13 = vpack.c.bf16 %v284_v6, %v282_v5  ;;  %v283_v15 = vld [vmem:[#allocation2 + $0x2b0] sm:$0xff]  ;;  %v222_v16 = vld [vmem:[#allocation2 + $0xc8] sm:$0xff]  ;;  %v662_v22 = vpack.c.bf16 %v219_v12, %v217_v11 }
  0x24   :  { %717 = vmatprep.subr.bf16.mxu0 %v716_v47  ;;  %655 = vmatpush1.bf16.msra.mxu1 %v654_v56  ;;  %v224_v17 = vld [vmem:[#allocation2 + $0xd8] sm:$0xff]  ;;  %v286_v20 = vld [vmem:[#allocation2 + $0x2c8] sm:$0xff]  ;;  %v726_v23 = vpack.c.bf16 %v283_v15, %v281_v14  ;;  %v221_v24 = vld [vmem:[#allocation2 + $0xc0] sm:$0xff] }
  0x25   :  { %657 = vmatprep.subr.bf16.mxu1 %v656_v59  ;;  %v288_v21 = vld [vmem:[#allocation2 + $0x2d8] sm:$0xff]  ;;  %v223_v25 = vld [vmem:[#allocation2 + $0xd0] sm:$0xff]  ;;  %v664_v26 = vpack.c.bf16 %v224_v17, %v222_v16  ;;  %v285_v28 = vld [vmem:[#allocation2 + $0x2c0] sm:$0xff] }
  0x26   :  { %802 = vset.pattern.permute.xlu0 %v836_v1  ;;  %v728_v27 = vpack.c.bf16 %v288_v21, %v286_v20  ;;  %v287_v29 = vld [vmem:[#allocation2 + $0x2d0] sm:$0xff]  ;;  %v226_v30 = vld [vmem:[#allocation2 + $0xe8] sm:$0xff]  ;;  %v666_v31 = vpack.c.bf16 %v223_v25, %v221_v24  ;;  %v292_v33 = vld [vmem:[#allocation2 + $0x2f8] sm:$0xff] }
  0x27   :  { %800 = vset.pattern.permute.xlu1 %v835_v0  ;;  %72 = vperm.xlu0 %802, %v30_v57   ;;  %v290_v32 = vld [vmem:[#allocation2 + $0x2e8] sm:$0xff]  ;;  %v730_v34 = vpack.c.bf16 %v287_v29, %v285_v28  ;;  %v225_v35 = vld [vmem:[#allocation2 + $0xe0] sm:$0xff]  ;;  %v227_v36 = vld [vmem:[#allocation2 + $0xf0] sm:$0xff] }
  0x28   :  { %100 = vperm.xlu1 %800, %v30_v57   ;;  %719 = vmatpush1.bf16.msra.mxu0 %v718_v58  ;;  %v289_v37 = vld [vmem:[#allocation2 + $0x2e0] sm:$0xff]  ;;  %v291_v39 = vld [vmem:[#allocation2 + $0x2f0] sm:$0xff]  ;;  %v230_v40 = vld [vmem:[#allocation2 + $0x108] sm:$0xff]  ;;  %v732_v42 = vpack.c.bf16 %v292_v33, %v290_v32  ;;  %v670_v45 = vpack.c.bf16 %v227_v36, %v225_v35 }
  0x29   :  { %721 = vmatprep.subr.bf16.mxu0 %v720_v60  ;;  %659 = vmatpush1.bf16.msra.mxu1 %v658_v7  ;;  %v232_v41 = vld [vmem:[#allocation2 + $0x118] sm:$0xff]  ;;  %v294_v43 = vld [vmem:[#allocation2 + $0x308] sm:$0xff]  ;;  %v734_v46 = vpack.c.bf16 %v291_v39, %v289_v37  ;;  %v229_v48 = vld [vmem:[#allocation2 + $0x100] sm:$0xff] }
  0x2a   :  { %661 = vmatprep.subr.bf16.mxu1 %v660_v10  ;;  %v296_v44 = vld [vmem:[#allocation2 + $0x318] sm:$0xff]  ;;  %v672_v47 = vpack.c.bf16 %v232_v41, %v230_v40  ;;  %v231_v49 = vld [vmem:[#allocation2 + $0x110] sm:$0xff]  ;;  %v293_v50 = vld [vmem:[#allocation2 + $0x300] sm:$0xff] }
  0x2b   :  { %805 = vset.pattern.permute.xlu0 %v838_v19  ;;  %v736_v51 = vpack.c.bf16 %v296_v44, %v294_v43  ;;  %v295_v52 = vld [vmem:[#allocation2 + $0x310] sm:$0xff]  ;;  %v234_v53 = vld [vmem:[#allocation2 + $0x128] sm:$0xff]  ;;  %v236_v54 = vld [vmem:[#allocation2 + $0x138] sm:$0xff] }
  0x2c   :  { %801 = vset.pattern.permute.xlu1 %v838_v19  ;;  %131 = vperm.xlu0 %805, %v894_v8   ;;  %v228_v19 = vld [vmem:[#allocation2 + $0xf8] sm:$0xff]  ;;  %v298_v55 = vld [vmem:[#allocation2 + $0x328] sm:$0xff]  ;;  %v676_v58 = vpack.c.bf16 %v236_v54, %v234_v53  ;;  %v233_v59 = vld [vmem:[#allocation2 + $0x120] sm:$0xff] }
  0x2d   :  { %128 = vperm.xlu1 %801, %v30_v57   ;;  %723 = vmatpush1.bf16.msra.mxu0 %v722_v9  ;;  %v668_v38 = vpack.c.bf16 %v228_v19, %v226_v30  ;;  %v300_v56 = vld [vmem:[#allocation2 + $0x338] sm:$0xff]  ;;  %v235_v60 = vld [vmem:[#allocation2 + $0x130] sm:$0xff]  ;;  %v297_v61 = vld [vmem:[#allocation2 + $0x320] sm:$0xff] }
  0x2e   :  { %725 = vmatprep.subr.bf16.mxu0 %v724_v13  ;;  %663 = vmatpush1.bf16.msra.mxu1 %v662_v22  ;;  %v740_v62 = vpack.c.bf16 %v300_v56, %v298_v55  ;;  %v299_v63 = vld [vmem:[#allocation2 + $0x330] sm:$0xff]  ;;  %v238_v2 = vld [vmem:[#allocation2 + $0x148] sm:$0xff]  ;;  %v240_v3 = vld [vmem:[#allocation2 + $0x158] sm:$0xff]  ;;  %v678_v6 = vpack.c.bf16 %v235_v60, %v233_v59 }
  0x2f   :  { %665 = vmatprep.subr.bf16.mxu1 %v664_v26  ;;  %v302_v4 = vld [vmem:[#allocation2 + $0x348] sm:$0xff]  ;;  %v304_v5 = vld [vmem:[#allocation2 + $0x358] sm:$0xff]  ;;  %v742_v7 = vpack.c.bf16 %v299_v63, %v297_v61  ;;  %v680_v9 = vpack.c.bf16 %v240_v3, %v238_v2  ;;  %v237_v10 = vld [vmem:[#allocation2 + $0x140] sm:$0xff] }
  0x30   :  { %v239_v11 = vld [vmem:[#allocation2 + $0x150] sm:$0xff]  ;;  %v301_v12 = vld [vmem:[#allocation2 + $0x340] sm:$0xff]  ;;  %v242_v14 = vld [vmem:[#allocation2 + $0x168] sm:$0xff] }
  0x31   :  { %803 = vset.pattern.permute.xlu1 %v837_v18  ;;  %727 = vmatpush1.bf16.msra.mxu0 %v726_v23  ;;  %v303_v13 = vld [vmem:[#allocation2 + $0x350] sm:$0xff]  ;;  %v244_v15 = vld [vmem:[#allocation2 + $0x178] sm:$0xff]  ;;  %v306_v16 = vld [vmem:[#allocation2 + $0x368] sm:$0xff]  ;;  %v682_v20 = vpack.c.bf16 %v239_v11, %v237_v10 }
  0x32   :  { %60 = vperm.xlu1 %803, %v30_v57   ;;  %729 = vmatprep.subr.bf16.mxu0 %v728_v27  ;;  %v674_v57 = vpack.c.bf16 %v231_v49, %v229_v48  ;;  %v308_v17 = vld [vmem:[#allocation2 + $0x378] sm:$0xff]  ;;  %v746_v21 = vpack.c.bf16 %v303_v13, %v301_v12  ;;  %v684_v22 = vpack.c.bf16 %v244_v15, %v242_v14  ;;  %v241_v23 = vld [vmem:[#allocation2 + $0x160] sm:$0xff]  ;;  %v243_v24 = vld [vmem:[#allocation2 + $0x170] sm:$0xff] }
  0x33   :  { %667 = vmatpush1.bf16.msra.mxu1 %v666_v31  ;;  %v305_v25 = vld [vmem:[#allocation2 + $0x360] sm:$0xff]  ;;  %v748_v26 = vpack.c.bf16 %v308_v17, %v306_v16  ;;  %v307_v27 = vld [vmem:[#allocation2 + $0x370] sm:$0xff]  ;;  %v246_v28 = vld [vmem:[#allocation2 + $0x188] sm:$0xff]  ;;  %v686_v19 = vpack.c.bf16 %v243_v24, %v241_v23  ;;  %v839_v23 = vmov 1.0  }
  0x34   :  { %669 = vmatprep.subr.bf16.mxu1 %v668_v38  ;;  %v248_v29 = vld [vmem:[#allocation2 + $0x198] sm:$0xff]  ;;  %v310_v30 = vld [vmem:[#allocation2 + $0x388] sm:$0xff]  ;;  %v245_v32 = vld [vmem:[#allocation2 + $0x180] sm:$0xff] }
  0x35   :  { %731 = vmatpush1.bf16.msra.mxu0 %v730_v34  ;;  %v688_v31 = vpack.c.bf16 %v248_v29, %v246_v28  ;;  %v247_v33 = vld [vmem:[#allocation2 + $0x190] sm:$0xff]  ;;  %v309_v34 = vld [vmem:[#allocation2 + $0x380] sm:$0xff]  ;;  %v250_v37 = vld [vmem:[#allocation2 + $0x1a8] sm:$0xff] }
  0x36   :  { %804 = vset.pattern.permute.xlu1 %v835_v0  ;;  %733 = vmatprep.subr.bf16.mxu0 %v732_v42  ;;  %v738_v0 = vpack.c.bf16 %v295_v52, %v293_v50  ;;  %v311_v36 = vld [vmem:[#allocation2 + $0x390] sm:$0xff]  ;;  %v252_v38 = vld [vmem:[#allocation2 + $0x1b8] sm:$0xff]  ;;  %v314_v39 = vld [vmem:[#allocation2 + $0x3a8] sm:$0xff]  ;;  %v690_v41 = vpack.c.bf16 %v247_v33, %v245_v32 }
  0x37   :  { %103 = vperm.xlu1 %804, %v894_v8   ;;  %671 = vmatpush1.bf16.msra.mxu1 %v670_v45  ;;  %v316_v40 = vld [vmem:[#allocation2 + $0x3b8] sm:$0xff]  ;;  %v754_v42 = vpack.c.bf16 %v311_v36, %v309_v34  ;;  %v692_v43 = vpack.c.bf16 %v252_v38, %v250_v37  ;;  %v249_v44 = vld [vmem:[#allocation2 + $0x1a0] sm:$0xff]  ;;  %v251_v45 = vld [vmem:[#allocation2 + $0x1b0] sm:$0xff] }
  0x38   :  { %673 = vmatprep.subr.bf16.mxu1 %v672_v47  ;;  %v756_v47 = vpack.c.bf16 %v316_v40, %v314_v39  ;;  %v315_v48 = vld [vmem:[#allocation2 + $0x3b0] sm:$0xff]  ;;  %v254_v49 = vld [vmem:[#allocation2 + $0x1c8] sm:$0xff]  ;;  %v256_v50 = vld [vmem:[#allocation2 + $0x1d8] sm:$0xff]  ;;  %v694_v53 = vpack.c.bf16 %v251_v45, %v249_v44 }
  0x39   :  { %735 = vmatpush1.bf16.msra.mxu0 %v734_v46  ;;  %v313_v46 = vld [vmem:[#allocation2 + $0x3a0] sm:$0xff]  ;;  %v320_v52 = vld [vmem:[#allocation2 + $0x3d8] sm:$0xff]  ;;  %v696_v55 = vpack.c.bf16 %v256_v50, %v254_v49  ;;  %v319_v59 = vld [vmem:[#allocation2 + $0x3d0] sm:$0xff] }
  0x3a   :  { %737 = vmatprep.subr.bf16.mxu0 %v736_v51  ;;  %v318_v51 = vld [vmem:[#allocation2 + $0x3c8] sm:$0xff]  ;;  %v758_v54 = vpack.c.bf16 %v315_v48, %v313_v46  ;;  %v253_v56 = vld [vmem:[#allocation2 + $0x1c0] sm:$0xff]  ;;  %v260_v61 = vld [vmem:[#allocation2 + $0x1f8] sm:$0xff] }
  0x3b   :  { %806 = vset.pattern.permute.xlu1 %v836_v1  ;;  %675 = vmatpush1.bf16.msra.mxu1 %v674_v57  ;;  %v744_v1 = vpack.c.bf16 %v304_v5, %v302_v4  ;;  %v255_v57 = vld [vmem:[#allocation2 + $0x1d0] sm:$0xff]  ;;  %v258_v60 = vld [vmem:[#allocation2 + $0x1e8] sm:$0xff]  ;;  %v324_v63 = vld [vmem:[#allocation2 + $0x3f8] sm:$0xff] }
  0x3c   :  { %75 = vperm.xlu1 %806, %v894_v8   ;;  %677 = vmatprep.subr.bf16.mxu1 %v676_v58  ;;  %v760_v58 = vpack.c.bf16 %v320_v52, %v318_v51  ;;  %v698_v2 = vpack.c.bf16 %v255_v57, %v253_v56  ;;  %v700_v4 = vpack.c.bf16 %v260_v61, %v258_v60  ;;  %v257_v5 = vld [vmem:[#allocation2 + $0x1e0] sm:$0xff]  ;;  %v323_v10 = vld [vmem:[#allocation2 + $0x3f0] sm:$0xff] }
  0x3d   :  { %739 = vmatpush1.bf16.msra.mxu0 %v738_v0  ;;  %v317_v0 = vld [vmem:[#allocation2 + $0x3c0] sm:$0xff] }
  0x3e   :  { %741 = vmatprep.subr.bf16.mxu0 %v740_v62  ;;  %v322_v62 = vld [vmem:[#allocation2 + $0x3e8] sm:$0xff]  ;;  %v762_v3 = vpack.c.bf16 %v319_v59, %v317_v0  ;;  %v325_v38 = vld [vmem:[%s918_s2] sm:$0x3] }
  0x3f   :  { %679 = vmatpush1.bf16.msra.mxu1 %v678_v6  ;;  %v259_v6 = vld [vmem:[#allocation2 + $0x1f0] sm:$0xff] }
  0x40   :  { %807 = vset.pattern.permute.xlu1 %v837_v18  ;;  %681 = vmatprep.subr.bf16.mxu1 %v680_v9  ;;  %v312_v18 = vld [vmem:[#allocation2 + $0x398] sm:$0xff]  ;;  %v321_v9 = vld [vmem:[#allocation2 + $0x3e0] sm:$0xff]  ;;  %v702_v11 = vpack.c.bf16 %v259_v6, %v257_v5 }
  0x41   :  { %63 = vperm.xlu1 %807, %v894_v8   ;;  %743 = vmatpush1.bf16.msra.mxu0 %v742_v7  ;;  %v750_v8 = vpack.c.bf16 %v307_v27, %v305_v25  ;;  %v752_v35 = vpack.c.bf16 %v312_v18, %v310_v30  ;;  %v764_v7 = vpack.c.bf16 %v324_v63, %v322_v62 }
  0x42   :  { %745 = vmatprep.subr.bf16.mxu0 %v744_v1  ;;  %v766_v12 = vpack.c.bf16 %v323_v10, %v321_v9  ;;  %v32_v1 = vlaneseq }
  0x43   :  { %683 = vmatpush1.bf16.msra.mxu1 %v682_v20 }
  0x44   :  { %685 = vmatprep.subr.bf16.mxu1 %v684_v22  ;;  %v33_v13 = vand.u32 127, %v32_v1  ;;  %v328_v36 = vshrl.u32 %v32_v1, 7 }
  0x45   :  { %747 = vmatpush1.bf16.msra.mxu0 %v746_v21 }
  0x46   :  { %749 = vmatprep.subr.bf16.mxu0 %v748_v26  ;;  %v36_v14 = vadd.s32 384, %v33_v13  ;;  %v34_v15 = vadd.s32 128, %v33_v13  ;;  %v35_v20 = vadd.s32 256, %v33_v13  ;;  %v329_v37 = vsub.s32 0, %v328_v36 }
  0x47   :  { %687 = vmatpush1.bf16.msra.mxu1 %v686_v19  ;;  %v333_v39 = vsub.s32 1, %v328_v36 }
  0x48   :  { %689 = vmatprep.subr.bf16.mxu1 %v688_v31  ;;  %v40_v16 = vand.u32 127, %v36_v14  ;;  %v38_v17 = vand.u32 127, %v34_v15  ;;  %v39_v24 = vand.u32 127, %v35_v20  ;;  %v330_v40 = vrot.slane %v325_v38, %v329_v37 }
  0x49   :  { %751 = vmatpush1.bf16.msra.mxu0 %v750_v8 }
  0x4a   :  { %753 = vmatprep.subr.bf16.mxu0 %v752_v35 }
  0x4b   :  { %691 = vmatpush1.bf16.msra.mxu1 %v690_v41  ;;  %v334_v41 = vrot.slane %v325_v38, %v333_v39 }
  0x4c   :  { %693 = vmatprep.subr.bf16.mxu1 %v692_v43 }
  0x4d   :  { %755 = vmatpush1.bf16.msra.mxu0 %v754_v42 }
  0x4e   :  { %757 = vmatprep.subr.bf16.mxu0 %v756_v47 }
  0x4f   :  { %695 = vmatpush1.bf16.msra.mxu1 %v694_v53 }
  0x50   :  { %697 = vmatprep.subr.bf16.mxu1 %v696_v55 }
  0x51   :  { %759 = vmatpush1.bf16.msra.mxu0 %v758_v54  ;;  %v525_v54 = vadd.s32 8, %v328_v36 }
  0x52   :  { %761 = vmatprep.subr.bf16.mxu0 %v760_v58 }
  0x53   :  { %699 = vmatpush1.bf16.msra.mxu1 %v698_v2 }
  0x54   :  { %701 = vmatprep.subr.bf16.mxu1 %v700_v4 }
  0x55   :  { %763 = vmatpush1.bf16.msra.mxu0 %v762_v3 }
  0x56   :  { %765 = vmatprep.subr.bf16.mxu0 %v764_v7 }
  0x57   :  { %703 = vmatpush1.bf16.msra.mxu1 %v702_v11 }
  0x59   :  { %767 = vmatpush1.bf16.msra.mxu0 %v766_v12  ;;  %v840_v12 = vmov 1983009808  }
  0x5a   :  { %v574_v1 = vunpack.c.l.s4 %v840_v12 }
  0x93   :  { %v67_v21 = vpop.permute.xlu1 %66  ;;  %v95_v22 = vpop.permute.xlu0 %94 }
  0x94   :  { %vm152_vm0 = vcmp.eq.s32.totalorder %v67_v21, %v40_v16  ;;  %vm150_vm1 = vcmp.eq.s32.totalorder %v95_v22, %v38_v17  ;;  %v575_v21 = vunpack.c.0.s8 %v574_v1 }
  0x95   :  { %632 = vmatprep.mubr.msk.f32.mxu0 %vm152_vm0, %v839_v23  ;;  %624 = vmatprep.mubr.msk.f32.mxu1 %vm150_vm1, %v839_v23  ;;  %vm530_vm0 = vcmp.lt.s32.totalorder %v525_v54, 14  ;;  %vm531_vm1 = vcmp.lt.s32.totalorder %v525_v54, 13 }
  0x98   :  { %v55_v25 = vpop.permute.xlu1 %54  ;;  %v123_v26 = vpop.permute.xlu0 %122 }
  0x99   :  { %vm151_vm2 = vcmp.eq.s32.totalorder %v55_v25, %v39_v24  ;;  %vm149_vm3 = vcmp.eq.s32.totalorder %v123_v26, %v33_v13 }
  0x9a   :  { %625 = vmatmul.mubr.msk.f32.vlgmr.msra.gmra.mrb[0].mxu1 %vm149_vm3, %v839_v23  ;;  %633 = vmatmul.mubr.msk.f32.vlgmr.msra.gmra.mrb[0].mxu0 %vm151_vm2, %v839_v23  ;;  %vm593_vm2 = vcmask 1041409   ;;  %vm595_vm3 = vcmask 1043459  }
  0x9c   :  { %v126_v27 = vpop.permute.xlu0 %125 }
  0x9d   :  { %v98_v28 = vpop.permute.xlu1 %97  ;;  %vm153_vm4 = vcmp.eq.s32.totalorder %v126_v27, %v33_v13 }
  0x9e   :  { %vm154_vm5 = vcmp.eq.s32.totalorder %v98_v28, %v38_v17 }
  0x9f   :  { %626 = vmatprep.mubr.msk.f32.mxu1 %vm154_vm5, %v839_v23  ;;  %vm599_vm5 = vcmask 1047559  }
  0xa0   :  { %627 = vmatmul.mubr.msk.f32.gmra.mrb[2].mxu1 %vm153_vm4, %v839_v23  ;;  %vm597_vm4 = vcmask 1045509  }
  0xa1   :  { %v58_v29 = vpop.permute.xlu0 %57 }
  0xa2   :  { %v70_v30 = vpop.permute.xlu1 %69  ;;  %vm155_vm6 = vcmp.eq.s32.totalorder %v58_v29, %v39_v24  ;;  %v578_v29 = vsub.s32 %v575_v21, %v328_v36 }
  0xa3   :  { %vm156_vm7 = vcmp.eq.s32.totalorder %v70_v30, %v40_v16 }
  0xa4   :  { %634 = vmatprep.mubr.msk.f32.mxu0 %vm156_vm7, %v839_v23 }
  0xa5   :  { %635 = vmatmul.mubr.msk.f32.gmra.mrb[2].mxu0 %vm155_vm6, %v839_v23 }
  0xa6   :  { %v73_v18 = vpop.permute.xlu0 %72 }
  0xa7   :  { %v101_v19 = vpop.permute.xlu1 %100  ;;  %vm160_vm8 = vcmp.eq.s32.totalorder %v73_v18, %v40_v16 }
  0xa8   :  { %vm158_vm9 = vcmp.eq.s32.totalorder %v101_v19, %v38_v17  ;;  %636 = vmatprep.mubr.msk.f32.mxu0 %vm160_vm8, %v839_v23 }
  0xa9   :  { %628 = vmatprep.mubr.msk.f32.mxu1 %vm158_vm9, %v839_v23 }
  0xab   :  { %v132_v32 = vpop.permute.xlu0 %131 }
  0xac   :  { %v129_v8 = vpop.permute.xlu1 %128  ;;  %vm161_vm12 = vcmp.eq.s32.totalorder %v132_v32, %v33_v13 }
  0xad   :  { %vm157_vm10 = vcmp.eq.s32.totalorder %v129_v8, %v33_v13 }
  0xae   :  { %629 = vmatmul.mubr.msk.f32.gmra.mrb[4].mxu1 %vm157_vm10, %v839_v23 }
  0xb1   :  { %v61_v31 = vpop.permute.xlu1 %60 }
  0xb2   :  { %vm159_vm11 = vcmp.eq.s32.totalorder %v61_v31, %v39_v24 }
  0xb3   :  { %637 = vmatmul.mubr.msk.f32.gmra.mrb[4].mxu0 %vm159_vm11, %v839_v23 }
  0xb6   :  { %v104_v33 = vpop.permute.xlu1 %103 }
  0xb7   :  { %vm162_vm13 = vcmp.eq.s32.totalorder %v104_v33, %v38_v17 }
  0xb8   :  { %630 = vmatprep.mubr.msk.f32.mxu1 %vm162_vm13, %v839_v23 }
  0xb9   :  { %631 = vmatmul.mubr.msk.f32.gmra.mrb[6].mxu1 %vm161_vm12, %v839_v23 }
  0xbb   :  { %v76_v34 = vpop.permute.xlu1 %75 }
  0xbc   :  { %vm164_vm14 = vcmp.eq.s32.totalorder %v76_v34, %v40_v16 }
  0xbd   :  { %638 = vmatprep.mubr.msk.f32.mxu0 %vm164_vm14, %v839_v23 }
  0xc0   :  { %v64_v35 = vpop.permute.xlu1 %63 }
  0xc1   :  { %vm163_vm15 = vcmp.eq.s32.totalorder %v64_v35, %v39_v24 }
  0xc2   :  { %639 = vmatmul.mubr.msk.f32.gmra.mrb[6].mxu0 %vm163_vm15, %v839_v23 }
 0x16d   :  { %v403_v42 = vpop.f32.mrb[0].mxu1  ;;  %v492_v43 = vpop.f32.mrb[0].mxu0 }
 0x16e   :  { %v404_v44 = vadd.f32 %v403_v42, %v330_v40  ;;  %v405_v45 = vpop.f32.mrb[1].mxu1  ;;  %v494_v46 = vpop.f32.mrb[1].mxu0 }
 0x16f   :  { %v406_v47 = vadd.f32 %v405_v45, %v334_v41 }
 0x170   :  { %v493_v48 = vadd.f32 %v492_v43, %v404_v44 }
 0x171   :  { %v495_v49 = vadd.f32 %v494_v46, %v406_v47 }
 0x172   :  { %v515_v59 = vmax.f32 %v493_v48, 0.0 }
 0x173   :  { %v409_v50 = vpop.f32.mrb[2].mxu1  ;;  %v516_v61 = vmax.f32 %v495_v49, 0.0 }
 0x174   :  { %v410_v51 = vadd.f32 %v409_v50, %v330_v40  ;;  %v411_v52 = vpop.f32.mrb[3].mxu1 }
 0x175   :  { %v412_v53 = vadd.f32 %v411_v52, %v334_v41 }
 0x178   :  { %v498_v55 = vpop.f32.mrb[2].mxu0 }
 0x179   :  { %v499_v56 = vadd.f32 %v498_v55, %v410_v51  ;;  %v500_v57 = vpop.f32.mrb[3].mxu0 }
 0x17a   :  { %v501_v0 = vadd.f32 %v500_v57, %v412_v53 }
 0x17b   :  { %v517_v58 = vmax.f32 %v499_v56, 0.0 }
 0x17c   :  { %v518_v60 = vmax.f32 %v501_v0, 0.0 }
 0x17d   :  { %v534_v62 = vsel %vm530_vm0, %v517_v58, 0.0 }
 0x17e   :  { %v540_v63 = vmax.f32 %v515_v59, %v534_v62  ;;  %v535_v2 = vsel %vm531_vm1, %v518_v60, 0.0 }
 0x17f   :  { %v547_v3 = vmax.f32 %v516_v61, %v535_v2 }
 0x180   :  { %v541_v4 = vrot.slane %v540_v63, 4 }
 0x181   :  { %v548_v5 = vrot.slane %v547_v3, 4  ;;  %v415_v6 = vpop.f32.mrb[4].mxu1 }
 0x182   :  { %v542_v7 = vmax.f32 %v540_v63, %v541_v4  ;;  %v416_v9 = vadd.f32 %v415_v6, %v330_v40  ;;  %v417_v10 = vpop.f32.mrb[5].mxu1 }
 0x183   :  { %v549_v11 = vmax.f32 %v547_v3, %v548_v5  ;;  %v418_v13 = vadd.f32 %v417_v10, %v334_v41 }
 0x184   :  { %v543_v14 = vrot.slane %v542_v7, 2 }
 0x185   :  { %v550_v15 = vrot.slane %v549_v11, 2 }
 0x186   :  { %v544_v16 = vmax.f32 %v542_v7, %v543_v14  ;;  %v504_v17 = vpop.f32.mrb[4].mxu0 }
 0x187   :  { %v551_v20 = vmax.f32 %v549_v11, %v550_v15  ;;  %v505_v22 = vadd.f32 %v504_v17, %v416_v9  ;;  %v506_v23 = vpop.f32.mrb[5].mxu0 }
 0x188   :  { %v545_v24 = vrot.slane %v544_v16, 1  ;;  %v507_v25 = vadd.f32 %v506_v23, %v418_v13 }
 0x189   :  { %v552_v26 = vrot.slane %v551_v20, 1  ;;  %v519_v39 = vmax.f32 %v505_v22, 0.0 }
 0x18a   :  { %v546_v27 = vmax.f32 %v544_v16, %v545_v24  ;;  %v520_v43 = vmax.f32 %v507_v25, 0.0 }
 0x18b   :  { %v553_v28 = vmax.f32 %v551_v20, %v552_v26 }
 0x18c   :  { %v421_v30 = vpop.f32.mrb[6].mxu1 }
 0x18d   :  { %v572_v18 = vcombine.low %v546_v27, %v553_v28  ;;  %v422_v19 = vadd.f32 %v421_v30, %v330_v40  ;;  %v423_v8 = vpop.f32.mrb[7].mxu1 }
 0x18e   :  { %v424_v31 = vadd.f32 %v423_v8, %v334_v41 }
 0x18f   :  { %v579_v32 = vrot.slane %v572_v18, %v578_v29 }
 0x195   :  { %v510_v33 = vpop.f32.mrb[6].mxu0 }
 0x196   :  { %v511_v34 = vadd.f32 %v510_v33, %v422_v19  ;;  %v512_v35 = vpop.f32.mrb[7].mxu0 }
 0x197   :  { %v513_v37 = vadd.f32 %v512_v35, %v424_v31 }
 0x198   :  { %v521_v38 = vmax.f32 %v511_v34, 0.0 }
 0x199   :  { %v522_v42 = vmax.f32 %v513_v37, 0.0 }
 0x19a   :  { %v538_v44 = vsel %vm530_vm0, %v521_v38, 0.0 }
 0x19b   :  { %v554_v45 = vmax.f32 %v519_v39, %v538_v44  ;;  %v539_v46 = vsel %vm531_vm1, %v522_v42, 0.0 }
 0x19c   :  { %v561_v36 = vmax.f32 %v520_v43, %v539_v46 }
 0x19d   :  { %v555_v47 = vrot.slane %v554_v45, 4 }
 0x19e   :  { %v562_v48 = vrot.slane %v561_v36, 4 }
 0x19f   :  { %v556_v40 = vmax.f32 %v554_v45, %v555_v47 }
 0x1a0   :  { %v563_v49 = vmax.f32 %v561_v36, %v562_v48 }
 0x1a1   :  { %v557_v41 = vrot.slane %v556_v40, 2 }
 0x1a2   :  { %v564_v50 = vrot.slane %v563_v49, 2 }
 0x1a3   :  { %v558_v51 = vmax.f32 %v556_v40, %v557_v41 }
 0x1a4   :  { %v565_v52 = vmax.f32 %v563_v49, %v564_v50 }
 0x1a5   :  { %v559_v53 = vrot.slane %v558_v51, 1 }
 0x1a6   :  { %v566_v55 = vrot.slane %v565_v52, 1 }
 0x1a7   :  { %v560_v56 = vmax.f32 %v558_v51, %v559_v53 }
 0x1a8   :  { %v567_v57 = vmax.f32 %v565_v52, %v566_v55 }
 0x1aa   :  { %v580_v0 = vcombine.low %v560_v56, %v567_v57 }
 0x1ac   :  { %v587_v58 = vrot.slane %v580_v0, %v578_v29 }
 0x1ae   :  { %v592_v59 = vrot.slane %v587_v58, 7 }
 0x1b0   :  { %v594_v54 = vsel %vm593_vm2, %v592_v59, %v579_v32 }
 0x1b1   :  { %v596_v60 = vsel %vm595_vm3, %v592_v59, %v594_v54 }
 0x1b2   :  { %v598_v61 = vsel %vm597_vm4, %v592_v59, %v596_v60 }
 0x1b3   :  { %v600_v62 = vsel %vm599_vm5, %v592_v59, %v598_v61 }
 0x1b4   :  { %602 = vst [vmem:[%s919_s3] sm:$0xf] %v600_v62 }
 0x1b5   :  { %607 = vsyncpa [#allocation3], 1 }

</bundles_post_ra>
